<compile_context>
chip_gen: v5e
topology: v5e:2x2
jax: 0.10.0
libtpu: 0.0.40
codegen_flags: <defaults>
</compile_context>

<pallas_src>
import functools

import jax
import jax.numpy as jnp
from jax.experimental import pallas as pl
from jax.experimental.pallas import tpu as pltpu


def _sum_to_1x1(v):
    """Full sum of a 2-D tile -> (1, 1): lane reduce, then sublane reduce."""
    return jnp.sum(jnp.sum(v, axis=-1, keepdims=True), axis=-2, keepdims=True)


# ---------------------------------------------------------------------------
# Kernel 1: faithful AutomaticWeightedLoss.forward(loss1, loss2)
# ---------------------------------------------------------------------------
def _awl_kernel(params_ref, loss1_ref, loss2_ref, out_ref):
    # params_ref: SMEM (2,) f32 ; loss1_ref / loss2_ref: SMEM (1,) f32
    # out_ref: VMEM (1, 1) f32
    one = jnp.ones((1, 1), jnp.float32)
    p0 = params_ref[0] * one            # broadcast SMEM scalar -> (1,1) vreg
    p1 = params_ref[1] * one
    psq0 = p0 * p0
    psq1 = p1 * p1
    # 0.5 / p^2 via the EUP reciprocal (approx -> co-issues with VPU work).
    w0 = 0.5 * pl.reciprocal(psq0, approx=True)
    w1 = 0.5 * pl.reciprocal(psq1, approx=True)
    t0 = w0 * loss1_ref[0] + jnp.log(1.0 + psq0)
    t1 = w1 * loss2_ref[0] + jnp.log(1.0 + psq1)
    out_ref[...] = t0 + t1              # explicit add, no cross-lane reduce


def automatic_weighted_loss(params, loss1, loss2):
    """params: (2,) f32 ; loss1/loss2: scalar f32.  Returns a (1, 1) f32 tile."""
    params = jnp.asarray(params, jnp.float32)
    loss1 = jnp.asarray(loss1, jnp.float32).reshape(1)
    loss2 = jnp.asarray(loss2, jnp.float32).reshape(1)
    return pl.pallas_call(
        _awl_kernel,
        out_shape=jax.ShapeDtypeStruct((1, 1), jnp.float32),
        in_specs=[
            pl.BlockSpec(memory_space=pltpu.MemorySpace.SMEM),
            pl.BlockSpec(memory_space=pltpu.MemorySpace.SMEM),
            pl.BlockSpec(memory_space=pltpu.MemorySpace.SMEM),
        ],
        out_specs=pl.BlockSpec(memory_space=pltpu.MemorySpace.VMEM),
    )(params, loss1, loss2)


# ---------------------------------------------------------------------------
# Kernel 2: fused loss reductions + uncertainty weighting (perf-review variant)
# ---------------------------------------------------------------------------
def _fused_kernel(inv_n1, inv_n2, params_ref, x1_ref, x2_ref, out_ref):
    # params_ref: SMEM (2,) f32 ; x1_ref / x2_ref: VMEM (rows, 128) f32
    # out_ref: VMEM (1, 1) f32
    x1 = x1_ref[...]
    x2 = x2_ref[...]
    l1 = _sum_to_1x1(x1 * x1) * inv_n1          # mean(x1**2); zero-padding safe
    l2 = _sum_to_1x1(jnp.abs(x2)) * inv_n2      # mean(|x2|)

    one = jnp.ones((1, 1), jnp.float32)
    p0 = params_ref[0] * one
    p1 = params_ref[1] * one
    psq0 = p0 * p0
    psq1 = p1 * p1
    w0 = 0.5 * pl.reciprocal(psq0, approx=True)
    w1 = 0.5 * pl.reciprocal(psq1, approx=True)
    # log(1+p0^2) + log(1+p1^2) == log((1+p0^2)*(1+p1^2)): one EUP log.
    reg = jnp.log((1.0 + psq0) * (1.0 + psq1))
    out_ref[...] = w0 * l1 + w1 * l2 + reg


def _to_lane_major(x):
    """Flatten to a lane-dense (rows, 128) f32 tile (zero-padded); return true count."""
    flat = jnp.ravel(x).astype(jnp.float32)
    n = flat.shape[0]
    pad = (-n) % 128
    if pad:
        flat = jnp.pad(flat, (0, pad))
    return flat.reshape(-1, 128), n


def fused_weighted_loss(params, x1, x2):
    """Computes AWL(mean(x1**2), mean(|x2|)) in a single pass.  Returns (1,1) f32."""
    params = jnp.asarray(params, jnp.float32)
    x1_2d, n1 = _to_lane_major(x1)
    x2_2d, n2 = _to_lane_major(x2)
    # TODO(synk): for tensors that do not fit VMEM, tile over a grid with a VMEM
    # accumulator and apply the weighting in a pl.when(last-step) epilogue.
    kernel = functools.partial(_fused_kernel, 1.0 / n1, 1.0 / n2)
    return pl.pallas_call(
        kernel,
        out_shape=jax.ShapeDtypeStruct((1, 1), jnp.float32),
        in_specs=[
            pl.BlockSpec(memory_space=pltpu.MemorySpace.SMEM),
            pl.BlockSpec(memory_space=pltpu.MemorySpace.VMEM),
            pl.BlockSpec(memory_space=pltpu.MemorySpace.VMEM),
        ],
        out_specs=pl.BlockSpec(memory_space=pltpu.MemorySpace.VMEM),
    )(params, x1_2d, x2_2d)


def _reference(params, loss1, loss2):
    p0sq = params[0] ** 2
    p1sq = params[1] ** 2
    return (0.5 / p0sq * loss1 + jnp.log(1.0 + p0sq)
            + 0.5 / p1sq * loss2 + jnp.log(1.0 + p1sq))


if __name__ == "__main__":
    key = jax.random.PRNGKey(0)
    k1, k2 = jax.random.split(key)

    # Deterministic parameter init matching torch.ones(num=2).
    params = jnp.ones((2,), dtype=jnp.float32)

    # Small inputs producing the two scalar losses.
    x1 = jax.random.normal(k1, (2, 4, 16, 16), dtype=jnp.float32)
    x2 = jax.random.normal(k2, (2, 8, 32), dtype=jnp.float32)
    loss1 = jnp.mean(x1 ** 2)
    loss2 = jnp.mean(jnp.abs(x2))

    ref = _reference(params, loss1, loss2)

    # 1) Faithful module forward (precomputed scalar losses).
    out_awl = jax.block_until_ready(automatic_weighted_loss(params, loss1, loss2))
    # 2) Fused variant (reductions + weighting in one kernel).
    out_fused = jax.block_until_ready(fused_weighted_loss(params, x1, x2))

    # Tolerance 1e-3: the approx EUP reciprocal trades a little precision for a
    # free divide; formula errors would be orders of magnitude larger.
    assert jnp.allclose(out_awl[0, 0], ref, rtol=1e-3, atol=1e-3), (out_awl, ref)
    assert jnp.allclose(out_fused[0, 0], ref, rtol=1e-3, atol=1e-3), (out_fused, ref)

    print("KERNEL_OK")
</pallas_src>

<mosaic_0001>
module attributes {stable_mosaic.version = 11 : i64} {
  func.func @_awl_kernel(%arg0: memref<2xf32, #tpu.memory_space<smem>>, %arg1: memref<1xf32, #tpu.memory_space<smem>>, %arg2: memref<1xf32, #tpu.memory_space<smem>>, %arg3: memref<1x1xf32, #tpu.memory_space<vmem>>) attributes {dimension_semantics = [], scalar_prefetch = 0 : i64, scratch_operands = 0 : i64, tpu.core_type = #tpu.core_type<tc>} {
    %cst = arith.constant 1.000000e+00 : f32
    %0 = vector.broadcast %cst : f32 to vector<1x1xf32>
    %c0 = arith.constant 0 : index
    %1 = memref.load %arg0[%c0] : memref<2xf32, #tpu.memory_space<smem>>
    %2 = vector.broadcast %1 : f32 to vector<1x1xf32>
    %3 = arith.mulf %2, %0 : vector<1x1xf32>
    %c1 = arith.constant 1 : index
    %4 = memref.load %arg0[%c1] : memref<2xf32, #tpu.memory_space<smem>>
    %5 = vector.broadcast %4 : f32 to vector<1x1xf32>
    %6 = arith.mulf %5, %0 : vector<1x1xf32>
    %7 = arith.mulf %3, %3 : vector<1x1xf32>
    %8 = arith.mulf %6, %6 : vector<1x1xf32>
    %9 = tpu.reciprocal %7 {approx = true} : vector<1x1xf32> -> vector<1x1xf32>
    %cst_0 = arith.constant 5.000000e-01 : f32
    %10 = vector.broadcast %cst_0 : f32 to vector<1x1xf32>
    %11 = arith.mulf %10, %9 : vector<1x1xf32>
    %12 = tpu.reciprocal %8 {approx = true} : vector<1x1xf32> -> vector<1x1xf32>
    %cst_1 = arith.constant 5.000000e-01 : f32
    %13 = vector.broadcast %cst_1 : f32 to vector<1x1xf32>
    %14 = arith.mulf %13, %12 : vector<1x1xf32>
    %c0_2 = arith.constant 0 : index
    %15 = memref.load %arg1[%c0_2] : memref<1xf32, #tpu.memory_space<smem>>
    %16 = vector.broadcast %15 : f32 to vector<1x1xf32>
    %17 = arith.mulf %11, %16 : vector<1x1xf32>
    %cst_3 = arith.constant 1.000000e+00 : f32
    %18 = vector.broadcast %cst_3 : f32 to vector<1x1xf32>
    %19 = arith.addf %18, %7 : vector<1x1xf32>
    %20 = math.log %19 : vector<1x1xf32>
    %21 = arith.addf %17, %20 : vector<1x1xf32>
    %c0_4 = arith.constant 0 : index
    %22 = memref.load %arg2[%c0_4] : memref<1xf32, #tpu.memory_space<smem>>
    %23 = vector.broadcast %22 : f32 to vector<1x1xf32>
    %24 = arith.mulf %14, %23 : vector<1x1xf32>
    %cst_5 = arith.constant 1.000000e+00 : f32
    %25 = vector.broadcast %cst_5 : f32 to vector<1x1xf32>
    %26 = arith.addf %25, %8 : vector<1x1xf32>
    %27 = math.log %26 : vector<1x1xf32>
    %28 = arith.addf %24, %27 : vector<1x1xf32>
    %29 = arith.addf %21, %28 : vector<1x1xf32>
    %c0_6 = arith.constant 0 : index
    %c0_7 = arith.constant 0 : index
    %30 = vector.load %arg3[%c0_6, %c0_7] : memref<1x1xf32, #tpu.memory_space<vmem>>, vector<1x1xf32>
    tpu.vector_store %arg3[%c0_6, %c0_7], %29 {strides = array<i32>} : memref<1x1xf32, #tpu.memory_space<vmem>>, vector<1x1xf32>,
    return
  }
}

</mosaic_0001>

<bundles_post_ra>
// kernel: tpu_custom_call.1
= control target key start
LH: loop header
LB: loop body
LE: loop exit
PB: predicated region body
PF: predicated region fallthrough
CT: control target
= control target key end

     0   :  { %10 = vsyncpa [#allocation6], 0  ;;  %s159_s0 = inlined_call_operand.vmem [shape: f32[2], index: 0, kind: input, shape index: {}]   ;;  %s160_s1 = inlined_call_operand.<no memory space> [shape: f32[1], index: 1, kind: input, shape index: {}]   ;;  %s161_s2 = inlined_call_operand.<no memory space> [shape: f32[1], index: 2, kind: input, shape index: {}]   ;;  %s162_s3 = inlined_call_operand.hbm [shape: f32[1,1], index: 3, kind: output, shape index: {}]  }
   0x1   :  { %11 = vsyncpa [#allocation5], 0  ;;  %s17_s14 = sshll.u32 %s159_s0, 4  ;;  %s125_s15 = smov [#allocation4]   ;;  %s18_s14 = int_to_ptr.vmem [resolvable:$true] %s17_s14 }
   0x2   :  { %20 = dma.vmem_to_smem %s18_s14, 16, %s125_s15, [#allocation6]  }
   0x3   :  { %121 = dma.done.wait [#allocation6], 16  }
   0x4   :  { %122 = vsyncadd [#allocation6], 4294967280 }
   0x5   :  { %29 = sfence }
   0x6   :  { %s30_s16 = sld [smem:[#allocation4]]  ;;  %v41_v7 = vstv %s160_s1  ;;  %v48_v10 = vstv %s161_s2  ;;  %s126_s21 = smov [#allocation7]   ;;  %vm55_vm0 = vcmask 0  }
   0x7   :  { %s74_s17 = sld [smem:[#allocation4 + $0x1]]  ;;  %s62_s22 = sshll.u32 %s126_s21, 4  ;;  %s63_s22 = int_to_ptr.vmem [resolvable:$true] %s62_s22 }
   0x8   :  { %s64_s1 = sshll.u32 %s162_s3, 4  ;;  %s65_s1 = int_to_ptr.hbm [resolvable:$true] %s64_s1 }
   0xc   :  { %v31_v0 = vstv %s30_s16 }
   0xd   :  { %v33_v1 = vstv %s74_s17  ;;  %v34_v2 = vmul.f32 %v31_v0, %v31_v0 }
   0xe   :  { %v35_v3 = vmul.f32 %v33_v1, %v33_v1 }
   0xf   :  { %77 = vrcp.f32 %v34_v2  ;;  %v43_v4 = vadd.f32 1.0, %v34_v2 }
  0x10   :  { %79 = vrcp.f32 %v35_v3  ;;  %v50_v5 = vadd.f32 1.0, %v35_v3 }
  0x11   :  { %81 = vlog2.f32 %v43_v4 }
  0x12   :  { %83 = vlog2.f32 %v50_v5 }
  0x15   :  { %v78_v6 = vpop.eup %77 }
  0x16   :  { %v80_v8 = vpop.eup %79  ;;  %v37_v9 = vmul.f32 0.5, %v78_v6 }
  0x17   :  { %v82_v11 = vpop.eup %81  ;;  %v39_v12 = vmul.f32 0.5, %v80_v8 }
  0x18   :  { %v84_v13 = vpop.eup %83  ;;  %v42_v14 = vmul.f32 %v41_v7, %v37_v9  ;;  %v45_v15 = vmul.f32 0.6931472, %v82_v11 }
  0x19   :  { %v49_v16 = vmul.f32 %v48_v10, %v39_v12  ;;  %v52_v17 = vmul.f32 0.6931472, %v84_v13 }
  0x1a   :  { %v46_v18 = vadd.f32 %v45_v15, %v42_v14 }
  0x1b   :  { %v53_v19 = vadd.f32 %v52_v17, %v49_v16 }
  0x1d   :  { %v54_v20 = vadd.f32 %v53_v19, %v46_v18 }
  0x1f   :  { %56 = vst.msk [vmem:[#allocation7] sm:$0x1] %vm55_vm0, %v54_v20 }
  0x20   :  { %67 = dma.vmem_to_hbm [thread:$0]  %s63_s22, 16, %s65_s1, [#allocation5]  }
  0x21   :  { %123 = dma.done.wait [#allocation5], 16  }
  0x22   :  { %124 = vsyncadd [#allocation5], 4294967280 }
  0x23   :  { %72 = vsyncpa [#allocation5], 1 }
  0x24   :  { %73 = vsyncpa [#allocation6], 1 }

</bundles_post_ra>
